<compile_context>
chip_gen: v7x
topology: tpu7x:2x2x1
jax: 0.10.0
libtpu: 0.0.40
codegen_flags: <defaults>
</compile_context>

<pallas_src>
import functools

import jax
import jax.numpy as jnp
from jax.experimental import pallas as pl
from jax.experimental.pallas import tpu as pltpu

_BN_EPS = 1e-5
_K = 5      # kernel_size (module default)
_PAD = 1    # padding     (module default)


def _round_up(v, m):
    return (v + m - 1) // m * m


# ----------------------------------------------------------------------------
# Fused kernel: Conv1d -> BN -> ReLU -> Conv1d -> BN -> ReLU
# ----------------------------------------------------------------------------
def convblock_b_kernel(x_ref, w1_ref, g1_ref, be1_ref, w2_ref, g2_ref, be2_ref,
                       o_ref, xpad_ref, a1pad_ref):
    """Whole ConvBlock_b forward in one kernel.

    x_ref    : (N, C_in, L)            input, NCL layout
    w1_ref   : (C_out, K*C_in_p)       conv1 weight, im2col layout [o, k*C_in_p + c]
    g1_ref   : (C_out, 1)              BN1 gamma
    be1_ref  : (C_out, 1)              BN1 beta
    w2_ref   : (C_out, K*C_mid_p)      conv2 weight, im2col layout
    g2_ref, be2_ref : (C_out, 1)       BN2 gamma / beta
    o_ref    : (N, C_out, L-4)         output
    xpad_ref : (N, C_in_p,  L+2)       VMEM scratch, zero-padded input
    a1pad_ref: (N, C_mid_p, L-2+2)     VMEM scratch, zero-padded stage-1 act.
    """
    n_b, c_in, l_in = x_ref.shape
    c_out = o_ref.shape[1]
    l1 = l_in + 2 * _PAD - _K + 1        # conv1 output length (= L - 2)
    l2 = l1 + 2 * _PAD - _K + 1          # conv2 output length (= L - 4)

    # ---- zero the padded scratch slabs; drop the input into the middle -----
    xpad_ref[...] = jnp.zeros_like(xpad_ref)
    a1pad_ref[...] = jnp.zeros_like(a1pad_ref)
    xpad_ref[:, 0:c_in, _PAD:_PAD + l_in] = x_ref[...].astype(jnp.float32)

    w1 = w1_ref[...]
    w2 = w2_ref[...]

    # ---- conv1: one im2col matmul per batch (K taps folded into the
    #      contraction dim); raw output parked in the padded stage-1 scratch
    #      so conv2 can consume it in place.  Conv bias is omitted: it is
    #      cancelled exactly by the training-mode BN mean subtraction. --------
    for n in range(n_b):
        cols = jnp.concatenate(
            [xpad_ref[n, :, k:k + l1] for k in range(_K)], axis=0)  # (K*C_in_p, L1)
        a1pad_ref[n, 0:c_out, _PAD:_PAD + l1] = jnp.dot(
            w1, cols, preferred_element_type=jnp.float32)           # (C_out, L1)

    # ---- BN1: training-mode batch stats over (N, L), biased variance,
    #      single pass (sum + sum-of-squares), then affine + ReLU in place ----
    y1 = a1pad_ref[:, 0:c_out, _PAD:_PAD + l1]                      # (N, C_out, L1)
    cnt1 = float(n_b * l1)
    s1 = jnp.sum(jnp.sum(y1, axis=-1, keepdims=True), axis=0)       # (C_out, 1)
    q1 = jnp.sum(jnp.sum(y1 * y1, axis=-1, keepdims=True), axis=0)  # (C_out, 1)
    mean1 = s1 / cnt1
    var1 = jnp.maximum(q1 / cnt1 - mean1 * mean1, 0.0)
    scale1 = jax.lax.rsqrt(var1 + _BN_EPS) * g1_ref[...]
    shift1 = be1_ref[...] - mean1 * scale1
    a1pad_ref[:, 0:c_out, _PAD:_PAD + l1] = jnp.maximum(
        y1 * scale1 + shift1, 0.0)

    # ---- conv2: same im2col-matmul scheme, writing raw output straight into
    #      the (lane-dense) output buffer ------------------------------------
    for n in range(n_b):
        cols = jnp.concatenate(
            [a1pad_ref[n, :, k:k + l2] for k in range(_K)], axis=0)  # (K*C_mid_p, L2)
        o_ref[n] = jnp.dot(w2, cols, preferred_element_type=jnp.float32)

    # ---- BN2 + ReLU, normalizing the output in place ------------------------
    y2 = o_ref[...]                                                  # (N, C_out, L2)
    cnt2 = float(n_b * l2)
    s2 = jnp.sum(jnp.sum(y2, axis=-1, keepdims=True), axis=0)
    q2 = jnp.sum(jnp.sum(y2 * y2, axis=-1, keepdims=True), axis=0)
    mean2 = s2 / cnt2
    var2 = jnp.maximum(q2 / cnt2 - mean2 * mean2, 0.0)
    scale2 = jax.lax.rsqrt(var2 + _BN_EPS) * g2_ref[...]
    shift2 = be2_ref[...] - mean2 * scale2
    o_ref[...] = jnp.maximum(y2 * scale2 + shift2, 0.0).astype(o_ref.dtype)


# ----------------------------------------------------------------------------
# Wrapper: weight re-layout + pallas_call plumbing
# ----------------------------------------------------------------------------
def convblock_b(x, params):
    """x: (N, C_in, L) float32, PyTorch NCL layout.  Returns (N, C_out, L-4)."""
    n, c_in, l = x.shape
    w1 = params["w1"].astype(jnp.float32)      # (C_out, C_in,  K) torch layout
    w2 = params["w2"].astype(jnp.float32)      # (C_out, C_out, K) torch layout
    c_out, _, k = w1.shape
    assert k == _K
    l1 = l + 2 * _PAD - _K + 1
    l2 = l1 + 2 * _PAD - _K + 1
    assert l2 >= 1, "input too short for two k=5, pad=1 convs"

    # Pad channel counts to multiples of 8 so every tap concatenation inside
    # the kernel is sublane-aligned.  Padded channels carry zero weights /
    # zero activations, so the math is unchanged.
    c_in_p = _round_up(c_in, 8)
    c_mid_p = _round_up(c_out, 8)

    # im2col weight layout: W[o, k*C_pad + c] = w[o, c, k]
    w1p = jnp.zeros((c_out, c_in_p, _K), jnp.float32).at[:, :c_in, :].set(w1)
    w1f = jnp.transpose(w1p, (0, 2, 1)).reshape(c_out, _K * c_in_p)
    w2p = jnp.zeros((c_out, c_mid_p, _K), jnp.float32).at[:, :c_out, :].set(w2)
    w2f = jnp.transpose(w2p, (0, 2, 1)).reshape(c_out, _K * c_mid_p)

    def col(v):  # per-channel vectors with channels on sublanes, broadcast over L
        return v.reshape(c_out, 1).astype(jnp.float32)

    # NOTE: conv biases (params["b1"], params["b2"]) are intentionally not
    # passed: training-mode BatchNorm cancels a per-channel constant exactly.
    vmem = pl.BlockSpec(memory_space=pltpu.MemorySpace.VMEM)
    return pl.pallas_call(
        convblock_b_kernel,
        out_shape=jax.ShapeDtypeStruct((n, c_out, l2), jnp.float32),
        in_specs=[vmem] * 7,
        out_specs=vmem,
        scratch_shapes=[
            pltpu.VMEM((n, c_in_p, l + 2 * _PAD), jnp.float32),
            pltpu.VMEM((n, c_mid_p, l1 + 2 * _PAD), jnp.float32),
        ],
        compiler_params=pltpu.CompilerParams(vmem_limit_bytes=32 * 1024 * 1024),
    )(x.astype(jnp.float32), w1f, col(params["g1"]), col(params["be1"]),
      w2f, col(params["g2"]), col(params["be2"]))


# ----------------------------------------------------------------------------
# Deterministic parameter init (PyTorch weight layout (C_out, C_in, K))
# ----------------------------------------------------------------------------
def init_params(key, ch_in, ch_out, k_size=_K):
    keys = iter(jax.random.split(key, 10))

    def nrm(shape, scale=0.1):
        return scale * jax.random.normal(next(keys), shape, jnp.float32)

    return {
        "w1": nrm((ch_out, ch_in, k_size)),
        "b1": nrm((ch_out,)),          # kept for module fidelity; cancelled by BN
        "g1": 1.0 + nrm((ch_out,)),
        "be1": nrm((ch_out,)),
        "w2": nrm((ch_out, ch_out, k_size)),
        "b2": nrm((ch_out,)),          # cancelled by BN
        "g2": 1.0 + nrm((ch_out,)),
        "be2": nrm((ch_out,)),
    }


if __name__ == "__main__":
    key = jax.random.PRNGKey(0)
    k_p, k_x = jax.random.split(key)

    # Small shapes; L chosen so the output length is 128 -> lane-dense stores.
    N, CH_IN, CH_OUT, L = 2, 4, 8, 132
    params = init_params(k_p, CH_IN, CH_OUT)
    x = jax.random.normal(k_x, (N, CH_IN, L), jnp.float32)

    fwd = jax.jit(functools.partial(convblock_b, params=params))
    out = jax.block_until_ready(fwd(x))

    assert out.shape == (N, CH_OUT, L - 4), out.shape
    assert bool(jnp.all(jnp.isfinite(out)))
    assert bool(jnp.all(out >= 0.0))       # ReLU output is non-negative
    print("KERNEL_OK")
</pallas_src>

<mosaic_0001>
module attributes {stable_mosaic.version = 11 : i64} {
  func.func @convblock_b_kernel(%arg0: memref<2x4x132xf32, #tpu.memory_space<vmem>>, %arg1: memref<8x40xf32, #tpu.memory_space<vmem>>, %arg2: memref<8x1xf32, #tpu.memory_space<vmem>>, %arg3: memref<8x1xf32, #tpu.memory_space<vmem>>, %arg4: memref<8x40xf32, #tpu.memory_space<vmem>>, %arg5: memref<8x1xf32, #tpu.memory_space<vmem>>, %arg6: memref<8x1xf32, #tpu.memory_space<vmem>>, %arg7: memref<2x8x128xf32, #tpu.memory_space<vmem>>, %arg8: memref<2x8x134xf32, #tpu.memory_space<vmem>>, %arg9: memref<2x8x132xf32, #tpu.memory_space<vmem>>) attributes {dimension_semantics = [], scalar_prefetch = 0 : i64, scratch_operands = 2 : i64, tpu.core_type = #tpu.core_type<tc>} {
    %cst = arith.constant 0.000000e+00 : f32
    %0 = vector.broadcast %cst : f32 to vector<2x8x134xf32>
    %c0 = arith.constant 0 : index
    %c0_0 = arith.constant 0 : index
    %c0_1 = arith.constant 0 : index
    %1 = vector.load %arg8[%c0, %c0_0, %c0_1] : memref<2x8x134xf32, #tpu.memory_space<vmem>>, vector<2x8x134xf32>
    tpu.vector_store %arg8[%c0, %c0_0, %c0_1], %0 {strides = array<i32>} : memref<2x8x134xf32, #tpu.memory_space<vmem>>, vector<2x8x134xf32>,
    %cst_2 = arith.constant 0.000000e+00 : f32
    %2 = vector.broadcast %cst_2 : f32 to vector<2x8x132xf32>
    %c0_3 = arith.constant 0 : index
    %c0_4 = arith.constant 0 : index
    %c0_5 = arith.constant 0 : index
    %3 = vector.load %arg9[%c0_3, %c0_4, %c0_5] : memref<2x8x132xf32, #tpu.memory_space<vmem>>, vector<2x8x132xf32>
    tpu.vector_store %arg9[%c0_3, %c0_4, %c0_5], %2 {strides = array<i32>} : memref<2x8x132xf32, #tpu.memory_space<vmem>>, vector<2x8x132xf32>,
    %c0_6 = arith.constant 0 : index
    %c0_7 = arith.constant 0 : index
    %c0_8 = arith.constant 0 : index
    %4 = vector.load %arg0[%c0_6, %c0_7, %c0_8] : memref<2x4x132xf32, #tpu.memory_space<vmem>>, vector<2x4x132xf32>
    %c0_9 = arith.constant 0 : index
    %c0_10 = arith.constant 0 : index
    %c1 = arith.constant 1 : index
    %5 = vector.load %arg8[%c0_9, %c0_10, %c1] : memref<2x8x134xf32, #tpu.memory_space<vmem>>, vector<2x4x132xf32>
    tpu.vector_store %arg8[%c0_9, %c0_10, %c1], %4 {strides = array<i32>} : memref<2x8x134xf32, #tpu.memory_space<vmem>>, vector<2x4x132xf32>,
    %c0_11 = arith.constant 0 : index
    %c0_12 = arith.constant 0 : index
    %6 = vector.load %arg1[%c0_11, %c0_12] : memref<8x40xf32, #tpu.memory_space<vmem>>, vector<8x40xf32>
    %c0_13 = arith.constant 0 : index
    %c0_14 = arith.constant 0 : index
    %7 = vector.load %arg4[%c0_13, %c0_14] : memref<8x40xf32, #tpu.memory_space<vmem>>, vector<8x40xf32>
    %c0_15 = arith.constant 0 : index
    %c0_16 = arith.constant 0 : index
    %c0_17 = arith.constant 0 : index
    %8 = vector.load %arg8[%c0_15, %c0_16, %c0_17] : memref<2x8x134xf32, #tpu.memory_space<vmem>>, vector<1x8x130xf32>
    %9 = vector.shape_cast %8 : vector<1x8x130xf32> to vector<8x130xf32>
    %c0_18 = arith.constant 0 : index
    %c0_19 = arith.constant 0 : index
    %c1_20 = arith.constant 1 : index
    %10 = vector.load %arg8[%c0_18, %c0_19, %c1_20] : memref<2x8x134xf32, #tpu.memory_space<vmem>>, vector<1x8x130xf32>
    %11 = vector.shape_cast %10 : vector<1x8x130xf32> to vector<8x130xf32>
    %c0_21 = arith.constant 0 : index
    %c0_22 = arith.constant 0 : index
    %c2 = arith.constant 2 : index
    %12 = vector.load %arg8[%c0_21, %c0_22, %c2] : memref<2x8x134xf32, #tpu.memory_space<vmem>>, vector<1x8x130xf32>
    %13 = vector.shape_cast %12 : vector<1x8x130xf32> to vector<8x130xf32>
    %c0_23 = arith.constant 0 : index
    %c0_24 = arith.constant 0 : index
    %c3 = arith.constant 3 : index
    %14 = vector.load %arg8[%c0_23, %c0_24, %c3] : memref<2x8x134xf32, #tpu.memory_space<vmem>>, vector<1x8x130xf32>
    %15 = vector.shape_cast %14 : vector<1x8x130xf32> to vector<8x130xf32>
    %c0_25 = arith.constant 0 : index
    %c0_26 = arith.constant 0 : index
    %c4 = arith.constant 4 : index
    %16 = vector.load %arg8[%c0_25, %c0_26, %c4] : memref<2x8x134xf32, #tpu.memory_space<vmem>>, vector<1x8x130xf32>
    %17 = vector.shape_cast %16 : vector<1x8x130xf32> to vector<8x130xf32>
    %18 = tpu.concatenate %9, %11, %13, %15, %17 in 0 : vector<8x130xf32>, vector<8x130xf32>, vector<8x130xf32>, vector<8x130xf32>, vector<8x130xf32> -> vector<40x130xf32>
    %cst_27 = arith.constant dense<0.000000e+00> : vector<8x130xf32>
    %19 = tpu.matmul %6, %18, %cst_27 {dimension_numbers = #tpu.dot_dimension_numbers<[1], [0], [0], [1], [0, 0, 1, 1], [], []>} : vector<8x40xf32>, vector<40x130xf32>, vector<8x130xf32> -> vector<8x130xf32>
    %c0_28 = arith.constant 0 : index
    %c0_29 = arith.constant 0 : index
    %c1_30 = arith.constant 1 : index
    %20 = vector.load %arg9[%c0_28, %c0_29, %c1_30] : memref<2x8x132xf32, #tpu.memory_space<vmem>>, vector<1x8x130xf32>
    %21 = vector.shape_cast %20 : vector<1x8x130xf32> to vector<8x130xf32>
    %22 = vector.shape_cast %19 : vector<8x130xf32> to vector<1x8x130xf32>
    tpu.vector_store %arg9[%c0_28, %c0_29, %c1_30], %22 {strides = array<i32>} : memref<2x8x132xf32, #tpu.memory_space<vmem>>, vector<1x8x130xf32>,
    %c1_31 = arith.constant 1 : index
    %c0_32 = arith.constant 0 : index
    %c0_33 = arith.constant 0 : index
    %23 = vector.load %arg8[%c1_31, %c0_32, %c0_33] : memref<2x8x134xf32, #tpu.memory_space<vmem>>, vector<1x8x130xf32>
    %24 = vector.shape_cast %23 : vector<1x8x130xf32> to vector<8x130xf32>
    %c1_34 = arith.constant 1 : index
    %c0_35 = arith.constant 0 : index
    %c1_36 = arith.constant 1 : index
    %25 = vector.load %arg8[%c1_34, %c0_35, %c1_36] : memref<2x8x134xf32, #tpu.memory_space<vmem>>, vector<1x8x130xf32>
    %26 = vector.shape_cast %25 : vector<1x8x130xf32> to vector<8x130xf32>
    %c1_37 = arith.constant 1 : index
    %c0_38 = arith.constant 0 : index
    %c2_39 = arith.constant 2 : index
    %27 = vector.load %arg8[%c1_37, %c0_38, %c2_39] : memref<2x8x134xf32, #tpu.memory_space<vmem>>, vector<1x8x130xf32>
    %28 = vector.shape_cast %27 : vector<1x8x130xf32> to vector<8x130xf32>
    %c1_40 = arith.constant 1 : index
    %c0_41 = arith.constant 0 : index
    %c3_42 = arith.constant 3 : index
    %29 = vector.load %arg8[%c1_40, %c0_41, %c3_42] : memref<2x8x134xf32, #tpu.memory_space<vmem>>, vector<1x8x130xf32>
    %30 = vector.shape_cast %29 : vector<1x8x130xf32> to vector<8x130xf32>
    %c1_43 = arith.constant 1 : index
    %c0_44 = arith.constant 0 : index
    %c4_45 = arith.constant 4 : index
    %31 = vector.load %arg8[%c1_43, %c0_44, %c4_45] : memref<2x8x134xf32, #tpu.memory_space<vmem>>, vector<1x8x130xf32>
    %32 = vector.shape_cast %31 : vector<1x8x130xf32> to vector<8x130xf32>
    %33 = tpu.concatenate %24, %26, %28, %30, %32 in 0 : vector<8x130xf32>, vector<8x130xf32>, vector<8x130xf32>, vector<8x130xf32>, vector<8x130xf32> -> vector<40x130xf32>
    %cst_46 = arith.constant dense<0.000000e+00> : vector<8x130xf32>
    %34 = tpu.matmul %6, %33, %cst_46 {dimension_numbers = #tpu.dot_dimension_numbers<[1], [0], [0], [1], [0, 0, 1, 1], [], []>} : vector<8x40xf32>, vector<40x130xf32>, vector<8x130xf32> -> vector<8x130xf32>
    %c1_47 = arith.constant 1 : index
    %c0_48 = arith.constant 0 : index
    %c1_49 = arith.constant 1 : index
    %35 = vector.load %arg9[%c1_47, %c0_48, %c1_49] : memref<2x8x132xf32, #tpu.memory_space<vmem>>, vector<1x8x130xf32>
    %36 = vector.shape_cast %35 : vector<1x8x130xf32> to vector<8x130xf32>
    %37 = vector.shape_cast %34 : vector<8x130xf32> to vector<1x8x130xf32>
    tpu.vector_store %arg9[%c1_47, %c0_48, %c1_49], %37 {strides = array<i32>} : memref<2x8x132xf32, #tpu.memory_space<vmem>>, vector<1x8x130xf32>,
    %c0_50 = arith.constant 0 : index
    %c0_51 = arith.constant 0 : index
    %c1_52 = arith.constant 1 : index
    %38 = vector.load %arg9[%c0_50, %c0_51, %c1_52] : memref<2x8x132xf32, #tpu.memory_space<vmem>>, vector<2x8x130xf32>
    %cst_53 = arith.constant dense<0.000000e+00> : vector<2x8xf32>
    %39 = vector.multi_reduction <add>, %38, %cst_53 [2] : vector<2x8x130xf32> to vector<2x8xf32>
    %40 = vector.shape_cast %39 : vector<2x8xf32> to vector<2x8x1xf32>
    %cst_54 = arith.constant dense<0.000000e+00> : vector<8x1xf32>
    %41 = vector.multi_reduction <add>, %40, %cst_54 [0] : vector<2x8x1xf32> to vector<8x1xf32>
    %42 = arith.mulf %38, %38 : vector<2x8x130xf32>
    %cst_55 = arith.constant dense<0.000000e+00> : vector<2x8xf32>
    %43 = vector.multi_reduction <add>, %42, %cst_55 [2] : vector<2x8x130xf32> to vector<2x8xf32>
    %44 = vector.shape_cast %43 : vector<2x8xf32> to vector<2x8x1xf32>
    %cst_56 = arith.constant dense<0.000000e+00> : vector<8x1xf32>
    %45 = vector.multi_reduction <add>, %44, %cst_56 [0] : vector<2x8x1xf32> to vector<8x1xf32>
    %cst_57 = arith.constant 2.600000e+02 : f32
    %46 = vector.broadcast %cst_57 : f32 to vector<8x1xf32>
    %47 = arith.divf %41, %46 : vector<8x1xf32>
    %cst_58 = arith.constant 2.600000e+02 : f32
    %48 = vector.broadcast %cst_58 : f32 to vector<8x1xf32>
    %49 = arith.divf %45, %48 : vector<8x1xf32>
    %50 = arith.mulf %47, %47 : vector<8x1xf32>
    %51 = arith.subf %49, %50 : vector<8x1xf32>
    %cst_59 = arith.constant 0.000000e+00 : f32
    %52 = vector.broadcast %cst_59 : f32 to vector<8x1xf32>
    %53 = arith.maximumf %51, %52 : vector<8x1xf32>
    %cst_60 = arith.constant 9.99999974E-6 : f32
    %54 = vector.broadcast %cst_60 : f32 to vector<8x1xf32>
    %55 = arith.addf %53, %54 : vector<8x1xf32>
    %56 = math.rsqrt %55 : vector<8x1xf32>
    %c0_61 = arith.constant 0 : index
    %c0_62 = arith.constant 0 : index
    %57 = vector.load %arg2[%c0_61, %c0_62] : memref<8x1xf32, #tpu.memory_space<vmem>>, vector<8x1xf32>
    %58 = arith.mulf %56, %57 : vector<8x1xf32>
    %c0_63 = arith.constant 0 : index
    %c0_64 = arith.constant 0 : index
    %59 = vector.load %arg3[%c0_63, %c0_64] : memref<8x1xf32, #tpu.memory_space<vmem>>, vector<8x1xf32>
    %60 = arith.mulf %47, %58 : vector<8x1xf32>
    %61 = arith.subf %59, %60 : vector<8x1xf32>
    %62 = vector.shape_cast %58 : vector<8x1xf32> to vector<1x8x1xf32>
    %63 = vector.broadcast %62 : vector<1x8x1xf32> to vector<2x8x130xf32>
    %64 = arith.mulf %38, %63 : vector<2x8x130xf32>
    %65 = vector.shape_cast %61 : vector<8x1xf32> to vector<1x8x1xf32>
    %66 = vector.broadcast %65 : vector<1x8x1xf32> to vector<2x8x130xf32>
    %67 = arith.addf %64, %66 : vector<2x8x130xf32>
    %cst_65 = arith.constant 0.000000e+00 : f32
    %68 = vector.broadcast %cst_65 : f32 to vector<2x8x130xf32>
    %69 = arith.maximumf %67, %68 : vector<2x8x130xf32>
    %c0_66 = arith.constant 0 : index
    %c0_67 = arith.constant 0 : index
    %c1_68 = arith.constant 1 : index
    %70 = vector.load %arg9[%c0_66, %c0_67, %c1_68] : memref<2x8x132xf32, #tpu.memory_space<vmem>>, vector<2x8x130xf32>
    tpu.vector_store %arg9[%c0_66, %c0_67, %c1_68], %69 {strides = array<i32>} : memref<2x8x132xf32, #tpu.memory_space<vmem>>, vector<2x8x130xf32>,
    %c0_69 = arith.constant 0 : index
    %c0_70 = arith.constant 0 : index
    %c0_71 = arith.constant 0 : index
    %71 = vector.load %arg9[%c0_69, %c0_70, %c0_71] : memref<2x8x132xf32, #tpu.memory_space<vmem>>, vector<1x8x128xf32>
    %72 = vector.shape_cast %71 : vector<1x8x128xf32> to vector<8x128xf32>
    %c0_72 = arith.constant 0 : index
    %c0_73 = arith.constant 0 : index
    %c1_74 = arith.constant 1 : index
    %73 = vector.load %arg9[%c0_72, %c0_73, %c1_74] : memref<2x8x132xf32, #tpu.memory_space<vmem>>, vector<1x8x128xf32>
    %74 = vector.shape_cast %73 : vector<1x8x128xf32> to vector<8x128xf32>
    %c0_75 = arith.constant 0 : index
    %c0_76 = arith.constant 0 : index
    %c2_77 = arith.constant 2 : index
    %75 = vector.load %arg9[%c0_75, %c0_76, %c2_77] : memref<2x8x132xf32, #tpu.memory_space<vmem>>, vector<1x8x128xf32>
    %76 = vector.shape_cast %75 : vector<1x8x128xf32> to vector<8x128xf32>
    %c0_78 = arith.constant 0 : index
    %c0_79 = arith.constant 0 : index
    %c3_80 = arith.constant 3 : index
    %77 = vector.load %arg9[%c0_78, %c0_79, %c3_80] : memref<2x8x132xf32, #tpu.memory_space<vmem>>, vector<1x8x128xf32>
    %78 = vector.shape_cast %77 : vector<1x8x128xf32> to vector<8x128xf32>
    %c0_81 = arith.constant 0 : index
    %c0_82 = arith.constant 0 : index
    %c4_83 = arith.constant 4 : index
    %79 = vector.load %arg9[%c0_81, %c0_82, %c4_83] : memref<2x8x132xf32, #tpu.memory_space<vmem>>, vector<1x8x128xf32>
    %80 = vector.shape_cast %79 : vector<1x8x128xf32> to vector<8x128xf32>
    %81 = tpu.concatenate %72, %74, %76, %78, %80 in 0 : vector<8x128xf32>, vector<8x128xf32>, vector<8x128xf32>, vector<8x128xf32>, vector<8x128xf32> -> vector<40x128xf32>
    %cst_84 = arith.constant dense<0.000000e+00> : vector<8x128xf32>
    %82 = tpu.matmul %7, %81, %cst_84 {dimension_numbers = #tpu.dot_dimension_numbers<[1], [0], [0], [1], [0, 0, 1, 1], [], []>} : vector<8x40xf32>, vector<40x128xf32>, vector<8x128xf32> -> vector<8x128xf32>
    %c0_85 = arith.constant 0 : index
    %c0_86 = arith.constant 0 : index
    %c0_87 = arith.constant 0 : index
    %83 = vector.load %arg7[%c0_85, %c0_86, %c0_87] : memref<2x8x128xf32, #tpu.memory_space<vmem>>, vector<1x8x128xf32>
    %84 = vector.shape_cast %83 : vector<1x8x128xf32> to vector<8x128xf32>
    %85 = vector.shape_cast %82 : vector<8x128xf32> to vector<1x8x128xf32>
    tpu.vector_store %arg7[%c0_85, %c0_86, %c0_87], %85 {strides = array<i32>} : memref<2x8x128xf32, #tpu.memory_space<vmem>>, vector<1x8x128xf32>,
    %c1_88 = arith.constant 1 : index
    %c0_89 = arith.constant 0 : index
    %c0_90 = arith.constant 0 : index
    %86 = vector.load %arg9[%c1_88, %c0_89, %c0_90] : memref<2x8x132xf32, #tpu.memory_space<vmem>>, vector<1x8x128xf32>
    %87 = vector.shape_cast %86 : vector<1x8x128xf32> to vector<8x128xf32>
    %c1_91 = arith.constant 1 : index
    %c0_92 = arith.constant 0 : index
    %c1_93 = arith.constant 1 : index
    %88 = vector.load %arg9[%c1_91, %c0_92, %c1_93] : memref<2x8x132xf32, #tpu.memory_space<vmem>>, vector<1x8x128xf32>
    %89 = vector.shape_cast %88 : vector<1x8x128xf32> to vector<8x128xf32>
    %c1_94 = arith.constant 1 : index
    %c0_95 = arith.constant 0 : index
    %c2_96 = arith.constant 2 : index
    %90 = vector.load %arg9[%c1_94, %c0_95, %c2_96] : memref<2x8x132xf32, #tpu.memory_space<vmem>>, vector<1x8x128xf32>
    %91 = vector.shape_cast %90 : vector<1x8x128xf32> to vector<8x128xf32>
    %c1_97 = arith.constant 1 : index
    %c0_98 = arith.constant 0 : index
    %c3_99 = arith.constant 3 : index
    %92 = vector.load %arg9[%c1_97, %c0_98, %c3_99] : memref<2x8x132xf32, #tpu.memory_space<vmem>>, vector<1x8x128xf32>
    %93 = vector.shape_cast %92 : vector<1x8x128xf32> to vector<8x128xf32>
    %c1_100 = arith.constant 1 : index
    %c0_101 = arith.constant 0 : index
    %c4_102 = arith.constant 4 : index
    %94 = vector.load %arg9[%c1_100, %c0_101, %c4_102] : memref<2x8x132xf32, #tpu.memory_space<vmem>>, vector<1x8x128xf32>
    %95 = vector.shape_cast %94 : vector<1x8x128xf32> to vector<8x128xf32>
    %96 = tpu.concatenate %87, %89, %91, %93, %95 in 0 : vector<8x128xf32>, vector<8x128xf32>, vector<8x128xf32>, vector<8x128xf32>, vector<8x128xf32> -> vector<40x128xf32>
    %cst_103 = arith.constant dense<0.000000e+00> : vector<8x128xf32>
    %97 = tpu.matmul %7, %96, %cst_103 {dimension_numbers = #tpu.dot_dimension_numbers<[1], [0], [0], [1], [0, 0, 1, 1], [], []>} : vector<8x40xf32>, vector<40x128xf32>, vector<8x128xf32> -> vector<8x128xf32>
    %c1_104 = arith.constant 1 : index
    %c0_105 = arith.constant 0 : index
    %c0_106 = arith.constant 0 : index
    %98 = vector.load %arg7[%c1_104, %c0_105, %c0_106] : memref<2x8x128xf32, #tpu.memory_space<vmem>>, vector<1x8x128xf32>
    %99 = vector.shape_cast %98 : vector<1x8x128xf32> to vector<8x128xf32>
    %100 = vector.shape_cast %97 : vector<8x128xf32> to vector<1x8x128xf32>
    tpu.vector_store %arg7[%c1_104, %c0_105, %c0_106], %100 {strides = array<i32>} : memref<2x8x128xf32, #tpu.memory_space<vmem>>, vector<1x8x128xf32>,
    %c0_107 = arith.constant 0 : index
    %c0_108 = arith.constant 0 : index
    %c0_109 = arith.constant 0 : index
    %101 = vector.load %arg7[%c0_107, %c0_108, %c0_109] : memref<2x8x128xf32, #tpu.memory_space<vmem>>, vector<2x8x128xf32>
    %cst_110 = arith.constant dense<0.000000e+00> : vector<2x8xf32>
    %102 = vector.multi_reduction <add>, %101, %cst_110 [2] : vector<2x8x128xf32> to vector<2x8xf32>
    %103 = vector.shape_cast %102 : vector<2x8xf32> to vector<2x8x1xf32>
    %cst_111 = arith.constant dense<0.000000e+00> : vector<8x1xf32>
    %104 = vector.multi_reduction <add>, %103, %cst_111 [0] : vector<2x8x1xf32> to vector<8x1xf32>
    %105 = arith.mulf %101, %101 : vector<2x8x128xf32>
    %cst_112 = arith.constant dense<0.000000e+00> : vector<2x8xf32>
    %106 = vector.multi_reduction <add>, %105, %cst_112 [2] : vector<2x8x128xf32> to vector<2x8xf32>
    %107 = vector.shape_cast %106 : vector<2x8xf32> to vector<2x8x1xf32>
    %cst_113 = arith.constant dense<0.000000e+00> : vector<8x1xf32>
    %108 = vector.multi_reduction <add>, %107, %cst_113 [0] : vector<2x8x1xf32> to vector<8x1xf32>
    %cst_114 = arith.constant 2.560000e+02 : f32
    %109 = vector.broadcast %cst_114 : f32 to vector<8x1xf32>
    %110 = arith.divf %104, %109 : vector<8x1xf32>
    %cst_115 = arith.constant 2.560000e+02 : f32
    %111 = vector.broadcast %cst_115 : f32 to vector<8x1xf32>
    %112 = arith.divf %108, %111 : vector<8x1xf32>
    %113 = arith.mulf %110, %110 : vector<8x1xf32>
    %114 = arith.subf %112, %113 : vector<8x1xf32>
    %cst_116 = arith.constant 0.000000e+00 : f32
    %115 = vector.broadcast %cst_116 : f32 to vector<8x1xf32>
    %116 = arith.maximumf %114, %115 : vector<8x1xf32>
    %cst_117 = arith.constant 9.99999974E-6 : f32
    %117 = vector.broadcast %cst_117 : f32 to vector<8x1xf32>
    %118 = arith.addf %116, %117 : vector<8x1xf32>
    %119 = math.rsqrt %118 : vector<8x1xf32>
    %c0_118 = arith.constant 0 : index
    %c0_119 = arith.constant 0 : index
    %120 = vector.load %arg5[%c0_118, %c0_119] : memref<8x1xf32, #tpu.memory_space<vmem>>, vector<8x1xf32>
    %121 = arith.mulf %119, %120 : vector<8x1xf32>
    %c0_120 = arith.constant 0 : index
    %c0_121 = arith.constant 0 : index
    %122 = vector.load %arg6[%c0_120, %c0_121] : memref<8x1xf32, #tpu.memory_space<vmem>>, vector<8x1xf32>
    %123 = arith.mulf %110, %121 : vector<8x1xf32>
    %124 = arith.subf %122, %123 : vector<8x1xf32>
    %125 = vector.shape_cast %121 : vector<8x1xf32> to vector<1x8x1xf32>
    %126 = vector.broadcast %125 : vector<1x8x1xf32> to vector<2x8x128xf32>
    %127 = arith.mulf %101, %126 : vector<2x8x128xf32>
    %128 = vector.shape_cast %124 : vector<8x1xf32> to vector<1x8x1xf32>
    %129 = vector.broadcast %128 : vector<1x8x1xf32> to vector<2x8x128xf32>
    %130 = arith.addf %127, %129 : vector<2x8x128xf32>
    %cst_122 = arith.constant 0.000000e+00 : f32
    %131 = vector.broadcast %cst_122 : f32 to vector<2x8x128xf32>
    %132 = arith.maximumf %130, %131 : vector<2x8x128xf32>
    %c0_123 = arith.constant 0 : index
    %c0_124 = arith.constant 0 : index
    %c0_125 = arith.constant 0 : index
    %133 = vector.load %arg7[%c0_123, %c0_124, %c0_125] : memref<2x8x128xf32, #tpu.memory_space<vmem>>, vector<2x8x128xf32>
    tpu.vector_store %arg7[%c0_123, %c0_124, %c0_125], %132 {strides = array<i32>} : memref<2x8x128xf32, #tpu.memory_space<vmem>>, vector<2x8x128xf32>,
    return
  }
}

</mosaic_0001>

<bundles_post_ra>
// kernel: convblock_b.1
= control target key start
LH: loop header
LB: loop body
LE: loop exit
PB: predicated region body
PF: predicated region fallthrough
CT: control target
= control target key end

     0   :  { %12 = vsyncpa [#allocation5], 0  ;;  %s1284_s0 = inlined_call_operand.hbm [shape: f32[2,4,132], index: 0, kind: input, shape index: {}]   ;;  %s1285_s1 = inlined_call_operand.vmem [shape: f32[8,40], index: 1, kind: input, shape index: {}]   ;;  %s1286_s2 = inlined_call_operand.hbm [shape: f32[8,1], index: 2, kind: input, shape index: {}]   ;;  %s1287_s3 = inlined_call_operand.hbm [shape: f32[8,1], index: 3, kind: input, shape index: {}]   ;;  %s1288_s4 = inlined_call_operand.vmem [shape: f32[8,40], index: 4, kind: input, shape index: {}]   ;;  %s1289_s5 = inlined_call_operand.hbm [shape: f32[8,1], index: 5, kind: input, shape index: {}]   ;;  %s1290_s6 = inlined_call_operand.hbm [shape: f32[8,1], index: 6, kind: input, shape index: {}]   ;;  %s1291_s7 = inlined_call_operand.hbm [shape: f32[2,8,128], index: 7, kind: output, shape index: {}]  }
   0x1   :  { %13 = vsyncpa [#allocation8], 0 }
   0x2   :  { %14 = vsyncpa [#allocation11], 0 }
   0x3   :  { %15 = vsyncpa [#allocation6], 0  ;;  %s1029_s24 = smov [#allocation7]   ;;  %s1030_s26 = smov [#allocation10]  }
   0x4   :  { %s36_s25 = sshll.u32 %s1029_s24, 4  ;;  %s58_s27 = sshll.u32 %s1030_s26, 4  ;;  %s37_s25 = int_to_ptr.vmem [resolvable:$true] %s36_s25  ;;  %s59_s27 = int_to_ptr.vmem [resolvable:$true] %s58_s27 }
   0x5   :  { %s889_s30 = scalar_lea.hbm %s1286_s2, 128 }
   0x6   :  { %p890_p0 = scmp.ne.s32.totalorder %s1286_s2, %s889_s30  ;;  %p893_p1 = scmp.lt.u32.totalorder %s889_s30, %s1286_s2 }
   0x8   :  { %p895_p2 = pnand %p893_p1, %p890_p0 }
   0xa   :  { %898 = shalt.err (!%p895_p2)
}
   0xb   :  { %s899_s12 = scalar_lea.vmem %s37_s25, 128  ;;  %p904_p4 = scmp.lt.s32.totalorder %s37_s25, %s37_s25 }
   0xc   :  { %p900_p3 = scmp.ne.s32.totalorder %s37_s25, %s899_s12  ;;  %p905_p5 = scmp.lt.s32.totalorder %s899_s12, %s899_s12 }
   0xe   :  { %p906_p6 = por %p905_p5, %p904_p4 }
  0x10   :  { %p907_p7 = pnand %p906_p6, %p900_p3 }
  0x12   :  { %910 = shalt.err (!%p907_p7)
}
  0x13   :  { %39 = dma.hbm_to_vmem [thread:$0]  %s1286_s2, 128, %s37_s25, [#allocation8]  }
  0x14   :  { %s911_s17 = scalar_lea.hbm %s1289_s5, 128 }
  0x15   :  { %p912_p8 = scmp.ne.s32.totalorder %s1289_s5, %s911_s17  ;;  %p915_p9 = scmp.lt.u32.totalorder %s911_s17, %s1289_s5 }
  0x17   :  { %p917_p10 = pnand %p915_p9, %p912_p8 }
  0x19   :  { %920 = shalt.err (!%p917_p10)
}
  0x1a   :  { %s921_s22 = scalar_lea.vmem %s59_s27, 128  ;;  %p926_p12 = scmp.lt.s32.totalorder %s59_s27, %s59_s27 }
  0x1b   :  { %p922_p11 = scmp.ne.s32.totalorder %s59_s27, %s921_s22  ;;  %p927_p13 = scmp.lt.s32.totalorder %s921_s22, %s921_s22 }
  0x1d   :  { %p928_p0 = por %p927_p13, %p926_p12 }
  0x1f   :  { %p929_p1 = pnand %p928_p0, %p922_p11 }
  0x21   :  { %932 = shalt.err (!%p929_p1)
}
  0x22   :  { %61 = dma.hbm_to_vmem [thread:$0]  %s1289_s5, 128, %s59_s27, [#allocation11]  }
  0x23   :  { %s1031_s24 = smov [#allocation4]   ;;  %s933_s29 = scalar_lea.hbm %s1284_s0, 256 }
  0x24   :  { %s21_s25 = sshll.u32 %s1031_s24, 4  ;;  %p934_p2 = scmp.ne.s32.totalorder %s1284_s0, %s933_s29  ;;  %s22_s25 = int_to_ptr.vmem [resolvable:$true] %s21_s25 }
  0x25   :  { %p937_p3 = scmp.lt.u32.totalorder %s933_s29, %s1284_s0 }
  0x27   :  { %p939_p4 = pnand %p937_p3, %p934_p2 }
  0x29   :  { %942 = shalt.err (!%p939_p4)
}
  0x2a   :  { %s943_s11 = scalar_lea.vmem %s22_s25, 256  ;;  %p948_p6 = scmp.lt.s32.totalorder %s22_s25, %s22_s25 }
  0x2b   :  { %p944_p5 = scmp.ne.s32.totalorder %s22_s25, %s943_s11  ;;  %p949_p7 = scmp.lt.s32.totalorder %s943_s11, %s943_s11 }
  0x2d   :  { %p950_p8 = por %p949_p7, %p948_p6 }
  0x2f   :  { %p951_p9 = pnand %p950_p8, %p944_p5 }
  0x31   :  { %954 = shalt.err (!%p951_p9)
}
  0x32   :  { %s1032_s5 = smov 128   ;;  %s1033_s27 = smov 8  }
  0x33   :  { %27 = dma.hbm_to_vmem [thread:$0]  %s1284_s0, 256, %s22_s25, [#allocation5], %s1032_s5, %s1032_s5, %s1033_s27  }
  0x34   :  { %s1034_s14 = smov [#allocation9]   ;;  %s1035_s16 = smov [#allocation12]  }
  0x35   :  { %s46_s15 = sshll.u32 %s1034_s14, 4  ;;  %s68_s17 = sshll.u32 %s1035_s16, 4  ;;  %s47_s15 = int_to_ptr.vmem [resolvable:$true] %s46_s15  ;;  %s69_s17 = int_to_ptr.vmem [resolvable:$true] %s68_s17 }
  0x36   :  { %s955_s20 = scalar_lea.hbm %s1287_s3, 128 }
  0x37   :  { %p956_p10 = scmp.ne.s32.totalorder %s1287_s3, %s955_s20  ;;  %p959_p11 = scmp.lt.u32.totalorder %s955_s20, %s1287_s3 }
  0x39   :  { %p961_p12 = pnand %p959_p11, %p956_p10 }
  0x3b   :  { %964 = shalt.err (!%p961_p12)
}
  0x3c   :  { %s965_s0 = scalar_lea.vmem %s47_s15, 128  ;;  %p970_p0 = scmp.lt.s32.totalorder %s47_s15, %s47_s15 }
  0x3d   :  { %p966_p13 = scmp.ne.s32.totalorder %s47_s15, %s965_s0  ;;  %p971_p1 = scmp.lt.s32.totalorder %s965_s0, %s965_s0 }
  0x3f   :  { %p972_p2 = por %p971_p1, %p970_p0 }
  0x41   :  { %p973_p3 = pnand %p972_p2, %p966_p13 }
  0x43   :  { %976 = shalt.err (!%p973_p3)
}
  0x44   :  { %49 = dma.hbm_to_vmem [thread:$0]  %s1287_s3, 128, %s47_s15, [#allocation8]  }
  0x45   :  { %s977_s29 = scalar_lea.hbm %s1290_s6, 128 }
  0x46   :  { %p978_p4 = scmp.ne.s32.totalorder %s1290_s6, %s977_s29  ;;  %p981_p5 = scmp.lt.u32.totalorder %s977_s29, %s1290_s6 }
  0x48   :  { %p983_p6 = pnand %p981_p5, %p978_p4 }
  0x4a   :  { %986 = shalt.err (!%p983_p6)
}
  0x4b   :  { %s987_s11 = scalar_lea.vmem %s69_s17, 128  ;;  %p992_p8 = scmp.lt.s32.totalorder %s69_s17, %s69_s17 }
  0x4c   :  { %p988_p7 = scmp.ne.s32.totalorder %s69_s17, %s987_s11  ;;  %p993_p9 = scmp.lt.s32.totalorder %s987_s11, %s987_s11 }
  0x4e   :  { %p994_p10 = por %p993_p9, %p992_p8 }
  0x50   :  { %p995_p11 = pnand %p994_p10, %p988_p7 }
  0x52   :  { %998 = shalt.err (!%p995_p11)
}
  0x53   :  { %71 = dma.hbm_to_vmem [thread:$0]  %s1290_s6, 128, %s69_s17, [#allocation11]  }
  0x54   :  { %1021 = dma.done.wait [#allocation5], 256  }
  0x55   :  { %1022 = vsyncadd [#allocation5], 4294967040 }
  0x56   :  { %1023 = dma.done.wait [#allocation8], 256  }
  0x57   :  { %1024 = vsyncadd [#allocation8], 4294967040 }
  0x58   :  { %1025 = dma.done.wait [#allocation11], 256  }
  0x59   :  { %1026 = vsyncadd [#allocation11], 4294967040  ;;  %vm88_vm0 = vcmask 48128   ;;  %v1036_v0 = vmov 0.0   ;;  %v98_v1 = vld [vmem:[#allocation4 + $0x8] sm:$0xff]  ;;  %v97_v2 = vld [vmem:[#allocation4] sm:$0xff] }
  0x5a   :  { %90 = vst [vmem:[#allocation2 + $0x10] sm:$0xff] %v1036_v0  ;;  %87 = vst [vmem:[#allocation2] sm:$0xff] %v1036_v0  ;;  %230 = vmatprep.mubr.f32.mxu0 %v1036_v0  ;;  %347 = vmatprep.mubr.f32.mxu1 %v1036_v0  ;;  %s1037_s6 = smov 1   ;;  %v102_v3 = vcombine.high %v98_v1, %v98_v1  ;;  %v101_v4 = vcombine.high %v97_v2, %v97_v2  ;;  %vm118_vm1 = vcmask 1043464   ;;  %vm111_vm2 = vcmask 7168   ;;  %s1038_s13 = smov 127  }
  0x5b   :  { %92 = vst [vmem:[#allocation3] sm:$0xff] %v1036_v0  ;;  %95 = vst [vmem:[#allocation3 + $0x10] sm:$0xff] %v1036_v0  ;;  %107 = vrot.lane.b32.xlu1 %v98_v1, %s1037_s6  ;;  %103 = vrot.lane.b32.xlu0 %v97_v2, %s1037_s6  ;;  %vm120_vm3 = vcmask 35840   ;;  %s1039_s14 = smov 125   ;;  %s1040_s15 = smov 126   ;;  %vm134_vm4 = vcmask 1039360  }
  0x5c   :  { %91 = vst.msk [vmem:[#allocation2 + $0x18] sm:$0xff] %vm88_vm0, %v1036_v0  ;;  %89 = vst.msk [vmem:[#allocation2 + $0x8] sm:$0xff] %vm88_vm0, %v1036_v0  ;;  %s1041_s16 = smov 124   ;;  %vm142_vm5 = vcmask 1031168   ;;  %vm150_vm6 = vcmask 1022976   ;;  %vm158_vm7 = vcmask 1014784  }
  0x5d   :  { %v124_v51 = vld [vmem:[%s1285_s1] sm:$0xff]  ;;  %vm162_vm8 = vcmask 326656   ;;  %vm93_vm9 = vcmask 31744   ;;  %vm246_vm10 = vcmask 1047560   ;;  %vm248_vm11 = vcmask 23552  }
  0x5e   :  { %94 = vst.msk [vmem:[#allocation3 + $0x8] sm:$0xff] %vm93_vm9, %v1036_v0  ;;  %96 = vst.msk [vmem:[#allocation3 + $0x18] sm:$0xff] %vm93_vm9, %v1036_v0  ;;  %vm388_vm12 = vcmask 15360   ;;  %vm1044_vm13 = vmmov 0  }
  0x5f   :  { %109 = vrot.lane.b32.xlu1 %v102_v3, %s1037_s6  ;;  %105 = vrot.lane.b32.xlu0 %v101_v4, %s1037_s6 }
  0xcd   :  { %v108_v5 = vpop.permute.xlu1 %107  ;;  %v104_v6 = vpop.permute.xlu0 %103 }
  0xce   :  { %122 = vst.msk [vmem:[#allocation2 + $0x10] sm:$0xf] %vm118_vm1, %v108_v5  ;;  %119 = vst.msk [vmem:[#allocation2] sm:$0xf] %vm118_vm1, %v104_v6 }
  0xd1   :  { %v110_v7 = vpop.permute.xlu1 %109  ;;  %v106_v8 = vpop.permute.xlu0 %105 }
  0xd2   :  { %v113_v9 = vsel %vm111_vm2, %v108_v5, %v110_v7  ;;  %v112_v10 = vsel %vm111_vm2, %v104_v6, %v106_v8 }
  0xd3   :  { %123 = vst.msk [vmem:[#allocation2 + $0x18] sm:$0xf] %vm120_vm3, %v113_v9  ;;  %121 = vst.msk [vmem:[#allocation2 + $0x8] sm:$0xf] %vm120_vm3, %v112_v10 }
  0xd5   :  { %v251_v11 = vld [vmem:[#allocation2 + $0x10] sm:$0xff]  ;;  %v126_v13 = vld [vmem:[#allocation2] sm:$0xff] }
  0xda   :  { %v252_v12 = vld [vmem:[#allocation2 + $0x18] sm:$0xff]  ;;  %v127_v14 = vld [vmem:[#allocation2 + $0x8] sm:$0xff] }
  0xdb   :  { %v826_v15 = vpack.i.bf16 %v252_v12, %v251_v11  ;;  %v821_v16 = vpack.i.bf16 %v127_v14, %v126_v13 }
  0xdd   :  { %827 = vrot.lane.b32.xlu1 %v826_v15, %s1038_s13  ;;  %822 = vrot.lane.b32.xlu0 %v821_v16, %s1038_s13 }
  0xe1   :  { %837 = vrot.lane.b32.xlu1 %v821_v16, %s1039_s14  ;;  %832 = vrot.lane.b32.xlu0 %v821_v16, %s1040_s15 }
  0xe5   :  { %847 = vrot.lane.b32.xlu1 %v826_v15, %s1039_s14  ;;  %842 = vrot.lane.b32.xlu0 %v826_v15, %s1040_s15 }
  0xe9   :  { %156 = vrot.lane.b32.xlu1 %v127_v14, %s1041_s16  ;;  %154 = vrot.lane.b32.xlu0 %v126_v13, %s1041_s16 }
  0xed   :  { %278 = vrot.lane.b32.xlu1 %v252_v12, %s1041_s16  ;;  %276 = vrot.lane.b32.xlu0 %v251_v11, %s1041_s16 }
 0x14f   :  { %v828_v17 = vpop.permute.xlu1 %827  ;;  %v823_v18 = vpop.permute.xlu0 %822 }
 0x150   :  { %v830_v19 = vunpack.i.h.bf16 %v828_v17  ;;  %v829_v20 = vunpack.i.l.bf16 %v828_v17  ;;  %v825_v21 = vunpack.i.h.bf16 %v823_v18  ;;  %v824_v22 = vunpack.i.l.bf16 %v823_v18 }
 0x152   :  { %v776_v23 = vpack.c.bf16 %v825_v21, %v127_v14  ;;  %v784_v24 = vpack.c.bf16 %v830_v19, %v252_v12  ;;  %v135_v25 = vsel %vm134_vm4, %v824_v22, %v825_v21  ;;  %v259_v26 = vsel %vm134_vm4, %v829_v20, %v830_v19 }
 0x153   :  { %v838_v27 = vpop.permute.xlu1 %837  ;;  %v833_v28 = vpop.permute.xlu0 %832  ;;  %v778_v29 = vpack.c.bf16 %v135_v25, %v126_v13  ;;  %v786_v30 = vpack.c.bf16 %v259_v26, %v251_v11 }
 0x154   :  { %v840_v31 = vunpack.i.h.bf16 %v838_v27  ;;  %v839_v32 = vunpack.i.l.bf16 %v838_v27  ;;  %v835_v33 = vunpack.i.h.bf16 %v833_v28  ;;  %v834_v34 = vunpack.i.l.bf16 %v833_v28  ;;  %777 = vmatprep.subr.bf16.mxu0 %v776_v23  ;;  %785 = vmatprep.subr.bf16.mxu1 %v784_v24 }
 0x155   :  { %779 = vmatpush1.bf16.msra.mxu0 %v778_v29  ;;  %787 = vmatpush1.bf16.msra.mxu1 %v786_v30 }
 0x156   :  { %v780_v35 = vpack.c.bf16 %v840_v31, %v835_v33  ;;  %v143_v36 = vsel %vm142_vm5, %v834_v34, %v835_v33  ;;  %v151_v37 = vsel %vm150_vm6, %v839_v32, %v840_v31  ;;  %v1042_v31 = vmov 0  }
 0x157   :  { %v848_v38 = vpop.permute.xlu1 %847  ;;  %v843_v39 = vpop.permute.xlu0 %842  ;;  %v782_v40 = vpack.c.bf16 %v151_v37, %v143_v36  ;;  %851 = vset.pattern.permute.xlu1 %v1042_v31  ;;  %852 = vset.pattern.permute.xlu0 %v1042_v31 }
 0x158   :  { %v850_v41 = vunpack.i.h.bf16 %v848_v38  ;;  %v849_v42 = vunpack.i.l.bf16 %v848_v38  ;;  %v845_v43 = vunpack.i.h.bf16 %v843_v39  ;;  %v844_v44 = vunpack.i.l.bf16 %v843_v39  ;;  %781 = vmatprep.subr.bf16.mxu0 %v780_v35 }
 0x159   :  { %783 = vmatpush1.bf16.msra.mxu0 %v782_v40 }
 0x15a   :  { %v788_v45 = vpack.c.bf16 %v850_v41, %v845_v43  ;;  %v266_v46 = vsel %vm142_vm5, %v844_v44, %v845_v43  ;;  %v273_v47 = vsel %vm150_vm6, %v849_v42, %v850_v41  ;;  %v437_v44 = vld [vmem:[#allocation7] sm:$0xff] }
 0x15b   :  { %v157_v48 = vpop.permute.xlu1 %156  ;;  %v155_v49 = vpop.permute.xlu0 %154  ;;  %v790_v50 = vpack.c.bf16 %v273_v47, %v266_v46  ;;  %v439_v47 = vld [vmem:[#allocation9] sm:$0xff] }
 0x15c   :  { %174 = vmatprep.subr.mxu0 %v157_v48  ;;  %789 = vmatprep.subr.bf16.mxu1 %v788_v45  ;;  %v159_v52 = vsel %vm158_vm7, %v155_v49, %v157_v48 }
 0x15d   :  { %175 = vmatpush1.msra.mxu0 %v159_v52  ;;  %791 = vmatpush1.bf16.msra.mxu1 %v790_v50 }
 0x15e   :  { %734 = vmatmul.mubr.msk.f32.vlgmr.msra.gmra.mrb[0].mxu0 %vm162_vm8, %v124_v51 }
 0x15f   :  { %v279_v53 = vpop.permute.xlu1 %278  ;;  %v277_v54 = vpop.permute.xlu0 %276  ;;  %760 = vmatprep.mubr.msk.f32.mxu0 %vm1044_vm13, %v1036_v0 }
 0x160   :  { %291 = vmatprep.subr.mxu1 %v279_v53  ;;  %v280_v55 = vsel %vm158_vm7, %v277_v54, %v279_v53 }
 0x161   :  { %292 = vmatpush1.msra.mxu1 %v280_v55 }
 0x162   :  { %735 = vmatmul.mubr.msk.f32.vlgmr.msra.gmra.mrb[0].mxu1 %vm162_vm8, %v124_v51 }
 0x163   :  { %773 = vmatprep.mubr.msk.f32.mxu1 %vm1044_vm13, %v1036_v0 }
 0x231   :  { %v232_v56 = vpop.f32.mrb[0].mxu0 }
 0x232   :  { %239 = vrot.lane.b32.xlu0 %v232_v56, %s1037_s6  ;;  %v234_v57 = vpop.f32.mrb[1].mxu0 }
 0x233   :  { %241 = vrot.lane.b32.xlu1 %v234_v57, %s1037_s6 }
 0x235   :  { %v349_v58 = vpop.f32.mrb[0].mxu1 }
 0x236   :  { %v351_v59 = vpop.f32.mrb[1].mxu1  ;;  %356 = vrot.lane.b32.xlu0 %v349_v58, %s1037_s6 }
 0x237   :  { %358 = vrot.lane.b32.xlu1 %v351_v59, %s1037_s6 }
 0x2a4   :  { %v240_v60 = vpop.permute.xlu0 %239 }
 0x2a5   :  { %247 = vst.msk [vmem:[#allocation3] sm:$0xff] %vm246_vm10, %v240_v60  ;;  %v242_v61 = vpop.permute.xlu1 %241 }
 0x2a6   :  { %v243_v62 = vsel %vm111_vm2, %v240_v60, %v242_v61 }
 0x2a7   :  { %249 = vst.msk [vmem:[#allocation3 + $0x8] sm:$0xff] %vm248_vm11, %v243_v62 }
 0x2a8   :  { %v357_v63 = vpop.permute.xlu0 %356 }
 0x2a9   :  { %364 = vst.msk [vmem:[#allocation3 + $0x10] sm:$0xff] %vm246_vm10, %v357_v63  ;;  %v359_v1 = vpop.permute.xlu1 %358 }
 0x2aa   :  { %v360_v2 = vsel %vm111_vm2, %v357_v63, %v359_v1  ;;  %v1043_v1 = vmov 0.0|0.0  }
 0x2ab   :  { %365 = vst.msk [vmem:[#allocation3 + $0x18] sm:$0xff] %vm248_vm11, %v360_v2  ;;  %792 = vmatprep.subr.bf16.mxu0 %v1043_v1  ;;  %798 = vmatprep.subr.bf16.mxu1 %v1043_v1 }
 0x2ac   :  { %v1198_v3 = vld [vmem:[#allocation3] sm:$0xff] }
 0x2ad   :  { %374 = vrot.lane.b32.xlu0 %v1198_v3, %s1038_s13  ;;  %v398_v7 = vmul.f32 %v1198_v3, %v1198_v3 }
 0x2ae   :  { %v1202_v4 = vld [vmem:[#allocation3 + $0x8] sm:$0xff] }
 0x2af   :  { %376 = vrot.lane.b32.xlu1 %v1202_v4, %s1038_s13  ;;  %v399_v8 = vmul.f32 %v1202_v4, %v1202_v4 }
 0x2b0   :  { %v1206_v5 = vld [vmem:[#allocation3 + $0x10] sm:$0xff] }
 0x2b1   :  { %378 = vrot.lane.b32.xlu0 %v1206_v5, %s1038_s13  ;;  %v400_v9 = vmul.f32 %v1206_v5, %v1206_v5 }
 0x2b2   :  { %v1210_v6 = vld [vmem:[#allocation3 + $0x18] sm:$0xff] }
 0x2b3   :  { %380 = vrot.lane.b32.xlu1 %v1210_v6, %s1038_s13  ;;  %v401_v10 = vmul.f32 %v1210_v6, %v1210_v6 }
 0x2b5   :  { %406 = vrot.lane.b32.xlu0 %v398_v7, %s1038_s13 }
 0x2b7   :  { %408 = vrot.lane.b32.xlu1 %v399_v8, %s1038_s13 }
 0x2b9   :  { %410 = vrot.lane.b32.xlu0 %v400_v9, %s1038_s13 }
 0x2bb   :  { %412 = vrot.lane.b32.xlu1 %v401_v10, %s1038_s13 }
 0x31f   :  { %v375_v11 = vpop.permute.xlu0 %374 }
 0x321   :  { %v377_v12 = vpop.permute.xlu1 %376 }
 0x322   :  { %v382_v13 = vsel %vm134_vm4, %v375_v11, %v377_v12  ;;  %v389_v14 = vsel %vm388_vm12, %v377_v12, 0.0 }
 0x323   :  { %v379_v15 = vpop.permute.xlu0 %378  ;;  %v390_v16 = vadd.f32 %v389_v14, %v382_v13 }
 0x325   :  { %391 = vadd.xlane.f32.xlu0 %v390_v16  ;;  %v381_v17 = vpop.permute.xlu1 %380 }
 0x326   :  { %v383_v18 = vsel %vm134_vm4, %v379_v15, %v381_v17  ;;  %v393_v19 = vsel %vm388_vm12, %v381_v17, 0.0 }
 0x327   :  { %v407_v20 = vpop.permute.xlu0 %406  ;;  %v394_v21 = vadd.f32 %v393_v19, %v383_v18 }
 0x329   :  { %395 = vadd.xlane.f32.xlu1 %v394_v21  ;;  %v409_v22 = vpop.permute.xlu1 %408 }
 0x32a   :  { %v414_v23 = vsel %vm134_vm4, %v407_v20, %v409_v22  ;;  %v420_v24 = vsel %vm388_vm12, %v409_v22, 0.0 }
 0x32b   :  { %v421_v25 = vadd.f32 %v420_v24, %v414_v23  ;;  %v411_v26 = vpop.permute.xlu0 %410 }
 0x32d   :  { %422 = vadd.xlane.f32.xlu0 %v421_v25  ;;  %v413_v27 = vpop.permute.xlu1 %412 }
 0x32e   :  { %v415_v28 = vsel %vm134_vm4, %v411_v26, %v413_v27  ;;  %v424_v29 = vsel %vm388_vm12, %v413_v27, 0.0 }
 0x32f   :  { %v425_v30 = vadd.f32 %v424_v29, %v415_v28 }
 0x331   :  { %426 = vadd.xlane.f32.xlu0 %v425_v30 }
 0x3b2   :  { %v392_v32 = vpop.xlane.xlu0 %391 }
 0x3b6   :  { %v396_v33 = vpop.xlane.xlu1 %395 }
 0x3b7   :  { %v397_v34 = vadd.f32 %v396_v33, %v392_v32 }
 0x3b9   :  { %v430_v36 = vmul.f32 0.0038461538, %v397_v34 }
 0x3ba   :  { %v423_v35 = vpop.xlane.xlu0 %422 }
 0x3bb   :  { %v432_v39 = vmul.f32 %v430_v36, %v430_v36 }
 0x3be   :  { %v427_v37 = vpop.xlane.xlu0 %426 }
 0x3bf   :  { %v428_v38 = vadd.f32 %v427_v37, %v423_v35 }
 0x3c1   :  { %v431_v40 = vmul.f32 0.0038461538, %v428_v38  ;;  %v125_v38 = vld [vmem:[%s1288_s4] sm:$0xff]  ;;  %s1045_s4 = smov [#allocation13]  }
 0x3c2   :  { %s720_s20 = sshll.u32 %s1045_s4, 4  ;;  %s721_s20 = int_to_ptr.vmem [resolvable:$true] %s720_s20 }
 0x3c3   :  { %v433_v41 = vsub.f32 %v431_v40, %v432_v39  ;;  %s999_s21 = scalar_lea.vmem %s721_s20, 256  ;;  %p1004_p13 = scmp.lt.s32.totalorder %s721_s20, %s721_s20 }
 0x3c4   :  { %p1000_p12 = scmp.ne.s32.totalorder %s721_s20, %s999_s21  ;;  %p1005_p0 = scmp.lt.s32.totalorder %s999_s21, %s999_s21 }
 0x3c5   :  { %v434_v42 = vmax.f32 %v433_v41, 0.0 }
 0x3c6   :  { %p1006_p1 = por %p1005_p0, %p1004_p13 }
 0x3c7   :  { %v435_v43 = vadd.f32 1e-05, %v434_v42 }
 0x3c8   :  { %p1007_p2 = pnand %p1006_p1, %p1000_p12 }
 0x3c9   :  { %885 = vrsqrt.f32 %v435_v43 }
 0x3d3   :  { %v886_v45 = vpop.eup %885 }
 0x3d4   :  { %v438_v46 = vmul.f32 %v886_v45, %v437_v44 }
 0x3d6   :  { %444 = vperm.xlu1 %851, %v438_v46   ;;  %v440_v48 = vmul.f32 %v438_v46, %v430_v36 }
 0x3d8   :  { %v441_v49 = vsub.f32 %v439_v47, %v440_v48 }
 0x3da   :  { %453 = vperm.xlu0 %852, %v441_v49  }
 0x455   :  { %v445_v50 = vpop.permute.xlu1 %444 }
 0x456   :  { %v447_v51 = vmul.f32 %v445_v50, %v1198_v3  ;;  %v448_v52 = vmul.f32 %v445_v50, %v1202_v4  ;;  %v449_v53 = vmul.f32 %v445_v50, %v1206_v5  ;;  %v450_v54 = vmul.f32 %v445_v50, %v1210_v6 }
 0x459   :  { %v454_v55 = vpop.permute.xlu0 %453 }
 0x45a   :  { %v456_v56 = vadd.f32 %v454_v55, %v447_v51  ;;  %v457_v57 = vadd.f32 %v454_v55, %v448_v52  ;;  %v458_v58 = vadd.f32 %v454_v55, %v449_v53  ;;  %v459_v59 = vadd.f32 %v454_v55, %v450_v54 }
 0x45c   :  { %v460_v60 = vmax.f32 %v456_v56, 0.0  ;;  %v461_v61 = vmax.f32 %v457_v57, 0.0  ;;  %v462_v62 = vmax.f32 %v458_v58, 0.0  ;;  %v463_v63 = vmax.f32 %v459_v59, 0.0 }
 0x45e   :  { %464 = vst.msk [vmem:[#allocation3] sm:$0xff] %vm246_vm10, %v460_v60  ;;  %466 = vst.msk [vmem:[#allocation3 + $0x10] sm:$0xff] %vm246_vm10, %v462_v62  ;;  %v692_v60 = vld [vmem:[#allocation10] sm:$0xff] }
 0x45f   :  { %465 = vst.msk [vmem:[#allocation3 + $0x8] sm:$0xff] %vm248_vm11, %v461_v61  ;;  %467 = vst.msk [vmem:[#allocation3 + $0x18] sm:$0xff] %vm248_vm11, %v463_v63  ;;  %v694_v63 = vld [vmem:[#allocation12] sm:$0xff] }
 0x465   :  { %v570_v2 = vld [vmem:[#allocation3 + $0x10] sm:$0xff]  ;;  %v468_v3 = vld [vmem:[#allocation3] sm:$0xff] }
 0x466   :  { %v469_v4 = vld [vmem:[#allocation3 + $0x8] sm:$0xff]  ;;  %592 = vrot.lane.b32.xlu0 %v570_v2, %s1041_s16  ;;  %v571_v6 = vld [vmem:[#allocation3 + $0x18] sm:$0xff] }
 0x467   :  { %v853_v5 = vpack.i.bf16 %v469_v4, %v468_v3  ;;  %v858_v7 = vpack.i.bf16 %v571_v6, %v570_v2 }
 0x469   :  { %854 = vrot.lane.b32.xlu1 %v853_v5, %s1038_s13 }
 0x46d   :  { %859 = vrot.lane.b32.xlu1 %v858_v7, %s1038_s13 }
 0x471   :  { %864 = vrot.lane.b32.xlu1 %v853_v5, %s1040_s15 }
 0x475   :  { %869 = vrot.lane.b32.xlu1 %v853_v5, %s1039_s14 }
 0x479   :  { %874 = vrot.lane.b32.xlu1 %v858_v7, %s1040_s15 }
 0x47d   :  { %879 = vrot.lane.b32.xlu1 %v858_v7, %s1039_s14 }
 0x481   :  { %490 = vrot.lane.b32.xlu1 %v468_v3, %s1041_s16 }
 0x485   :  { %492 = vrot.lane.b32.xlu1 %v469_v4, %s1041_s16 }
 0x489   :  { %594 = vrot.lane.b32.xlu1 %v571_v6, %s1041_s16 }
 0x4d8   :  { %v593_v40 = vpop.permute.xlu0 %592 }
 0x4db   :  { %v855_v8 = vpop.permute.xlu1 %854 }
 0x4dc   :  { %v857_v9 = vunpack.i.h.bf16 %v855_v8  ;;  %v856_v10 = vunpack.i.l.bf16 %v855_v8 }
 0x4de   :  { %v476_v11 = vsel %vm134_vm4, %v856_v10, %v857_v9 }
 0x4df   :  { %v793_v12 = vpack.c.bf16 %v476_v11, %v468_v3  ;;  %v860_v13 = vpop.permute.xlu1 %859 }
 0x4e0   :  { %v862_v14 = vunpack.i.h.bf16 %v860_v13  ;;  %v861_v15 = vunpack.i.l.bf16 %v860_v13 }
 0x4e1   :  { %794 = vmatpush3.bf16.msra.mxu0 %v793_v12 }
 0x4e2   :  { %v578_v16 = vsel %vm134_vm4, %v861_v15, %v862_v14  ;;  %795 = vmatprep.subr.bf16.mxu0 %v1043_v1 }
 0x4e3   :  { %v799_v17 = vpack.c.bf16 %v578_v16, %v570_v2  ;;  %v865_v18 = vpop.permute.xlu1 %864 }
 0x4e4   :  { %v867_v19 = vunpack.i.h.bf16 %v865_v18  ;;  %v866_v20 = vunpack.i.l.bf16 %v865_v18 }
 0x4e5   :  { %800 = vmatpush3.bf16.msra.mxu1 %v799_v17 }
 0x4e6   :  { %801 = vmatprep.subr.bf16.mxu1 %v1043_v1  ;;  %v482_v24 = vsel %vm142_vm5, %v866_v20, %v867_v19 }
 0x4e7   :  { %v870_v21 = vpop.permute.xlu1 %869 }
 0x4e8   :  { %v872_v22 = vunpack.i.h.bf16 %v870_v21  ;;  %v871_v23 = vunpack.i.l.bf16 %v870_v21 }
 0x4ea   :  { %v488_v25 = vsel %vm150_vm6, %v871_v23, %v872_v22 }
 0x4eb   :  { %v796_v26 = vpack.c.bf16 %v488_v25, %v482_v24  ;;  %v875_v27 = vpop.permute.xlu1 %874 }
 0x4ec   :  { %v877_v28 = vunpack.i.h.bf16 %v875_v27  ;;  %v876_v29 = vunpack.i.l.bf16 %v875_v27 }
 0x4ed   :  { %797 = vmatpush3.bf16.msra.mxu0 %v796_v26 }
 0x4ee   :  { %758 = vmatprep.subr.mxu0 %v1036_v0  ;;  %v584_v33 = vsel %vm142_vm5, %v876_v29, %v877_v28 }
 0x4ef   :  { %v880_v30 = vpop.permute.xlu1 %879 }
 0x4f0   :  { %v882_v31 = vunpack.i.h.bf16 %v880_v30  ;;  %v881_v32 = vunpack.i.l.bf16 %v880_v30 }
 0x4f2   :  { %v590_v34 = vsel %vm150_vm6, %v881_v32, %v882_v31 }
 0x4f3   :  { %v802_v35 = vpack.c.bf16 %v590_v34, %v584_v33  ;;  %v491_v36 = vpop.permute.xlu1 %490 }
 0x4f5   :  { %803 = vmatpush3.bf16.msra.mxu1 %v802_v35 }
 0x4f6   :  { %771 = vmatprep.subr.mxu1 %v1036_v0 }
 0x4f7   :  { %v493_v37 = vpop.permute.xlu1 %492 }
 0x4f8   :  { %v494_v39 = vsel %vm158_vm7, %v491_v36, %v493_v37 }
 0x4f9   :  { %759 = vmatpush3.msra.mxu0 %v494_v39 }
 0x4fa   :  { %761 = vmatmul.mubr.msk.f32.vlgmr.msra.gmra.mrb[2].mxu0 %vm162_vm8, %v125_v38 }
 0x4fb   :  { %v595_v41 = vpop.permute.xlu1 %594 }
 0x4fc   :  { %v596_v42 = vsel %vm158_vm7, %v593_v40, %v595_v41 }
 0x4fd   :  { %772 = vmatpush3.msra.mxu1 %v596_v42 }
 0x4fe   :  { %774 = vmatmul.mubr.msk.f32.vlgmr.msra.gmra.mrb[2].mxu1 %vm162_vm8, %v125_v38 }
 0x5cd   :  { %v565_v43 = vpop.f32.mrb[2].mxu0 }
 0x5ce   :  { %v762_v44 = vpop.f32.mrb[3].mxu0  ;;  %672 = vadd.xlane.f32.xlu0 %v565_v43  ;;  %v677_v0 = vmul.f32 %v565_v43, %v565_v43 }
 0x5d1   :  { %v664_v45 = vpop.f32.mrb[2].mxu1 }
 0x5d2   :  { %v775_v46 = vpop.f32.mrb[3].mxu1  ;;  %674 = vadd.xlane.f32.xlu1 %v664_v45  ;;  %679 = vadd.xlane.f32.xlu0 %v677_v0  ;;  %v678_v47 = vmul.f32 %v664_v45, %v664_v45 }
 0x5d6   :  { %681 = vadd.xlane.f32.xlu0 %v678_v47 }
 0x65b   :  { %v673_v48 = vpop.xlane.xlu0 %672 }
 0x65f   :  { %v675_v49 = vpop.xlane.xlu1 %674  ;;  %v680_v50 = vpop.xlane.xlu0 %679 }
 0x660   :  { %v676_v51 = vadd.f32 %v675_v49, %v673_v48 }
 0x662   :  { %v685_v52 = vmul.f32 0.00390625, %v676_v51 }
 0x663   :  { %v682_v53 = vpop.xlane.xlu0 %681 }
 0x664   :  { %v683_v54 = vadd.f32 %v682_v53, %v680_v50  ;;  %v687_v55 = vmul.f32 %v685_v52, %v685_v52 }
 0x666   :  { %v686_v56 = vmul.f32 0.00390625, %v683_v54 }
 0x668   :  { %v688_v57 = vsub.f32 %v686_v56, %v687_v55 }
 0x66a   :  { %v689_v58 = vmax.f32 %v688_v57, 0.0 }
 0x66c   :  { %v690_v59 = vadd.f32 1e-05, %v689_v58 }
 0x66e   :  { %887 = vrsqrt.f32 %v690_v59 }
 0x678   :  { %v888_v61 = vpop.eup %887 }
 0x679   :  { %v693_v62 = vmul.f32 %v888_v61, %v692_v60 }
 0x67b   :  { %699 = vperm.xlu1 %851, %v693_v62   ;;  %v695_v1 = vmul.f32 %v693_v62, %v685_v52 }
 0x67d   :  { %v696_v2 = vsub.f32 %v694_v63, %v695_v1 }
 0x67f   :  { %706 = vperm.xlu0 %852, %v696_v2  }
 0x6fa   :  { %v700_v3 = vpop.permute.xlu1 %699 }
 0x6fb   :  { %v702_v4 = vmul.f32 %v700_v3, %v565_v43  ;;  %v703_v5 = vmul.f32 %v700_v3, %v664_v45 }
 0x6fe   :  { %v707_v6 = vpop.permute.xlu0 %706 }
 0x6ff   :  { %v709_v7 = vadd.f32 %v707_v6, %v702_v4  ;;  %v710_v8 = vadd.f32 %v707_v6, %v703_v5 }
 0x701   :  { %v711_v9 = vmax.f32 %v709_v7, 0.0  ;;  %v712_v10 = vmax.f32 %v710_v8, 0.0 }
 0x703   :  { %713 = vst [vmem:[#allocation13] sm:$0xff] %v711_v9  ;;  %714 = vst [vmem:[#allocation13 + $0x8] sm:$0xff] %v712_v10 }
 0x704   :  { %1010 = shalt.err (!%p1007_p2)
}
 0x705   :  { %s1011_s23 = scalar_lea.hbm %s1291_s7, 256 }
 0x706   :  { %p1012_p3 = scmp.ne.s32.totalorder %s1291_s7, %s1011_s23  ;;  %p1015_p4 = scmp.lt.u32.totalorder %s1011_s23, %s1291_s7 }
 0x708   :  { %p1017_p5 = pnand %p1015_p4, %p1012_p3 }
 0x70a   :  { %1020 = shalt.err (!%p1017_p5)
}
 0x70b   :  { %726 = dma.vmem_to_hbm [thread:$0]  %s721_s20, 256, %s1291_s7, [#allocation6], %s1032_s5, %s1032_s5, %s1033_s27  }
 0x70c   :  { %1027 = dma.done.wait [#allocation6], 256  }
 0x70d   :  { %1028 = vsyncadd [#allocation6], 4294967040 }
 0x70e   :  { %730 = vsyncpa [#allocation5], 1 }
 0x70f   :  { %731 = vsyncpa [#allocation8], 1 }
 0x710   :  { %732 = vsyncpa [#allocation11], 1 }
 0x711   :  { %733 = vsyncpa [#allocation6], 1 }

</bundles_post_ra>
